<compile_context>
chip_gen: v7x
topology: tpu7x:2x2x1
jax: 0.10.0
libtpu: 0.0.40
codegen_flags: <defaults>
</compile_context>

<pallas_src>
import jax
import jax.numpy as jnp
from jax.experimental import pallas as pl
from jax.experimental.pallas import tpu as pltpu

_LANE = 128       # TPU lane width (last-dim vreg extent)
_SUBLANE = 8      # TPU sublane width (second-to-last dim vreg extent, f32)

_VMEM_TILE_BUDGET = 20 * 1024 * 1024   # target for total live tile bytes
_VMEM_LIMIT_BYTES = 32 * 1024 * 1024   # scoped VMEM limit (safe on v5e/v6e/v7x)
_MAX_TM = 1024                         # batch-tile cap (review: allow up to 1024)
_MAX_TK = 2048                         # K-tile cap


def _round_up(x: int, m: int) -> int:
    return ((x + m - 1) // m) * m


def _pick_k_tile(in_feat: int, bytes_per_k_row: int, budget: int) -> int:
    """Largest K tile that divides in_feat and keeps 2x weight tiles <= budget."""
    if 2 * in_feat * bytes_per_k_row <= budget:
        return in_feat                      # whole-K weight tile fits comfortably
    cap = max(_SUBLANE, min(_MAX_TK, in_feat, budget // (2 * bytes_per_k_row)))
    best = None
    for cand in range(cap, 0, -1):
        if in_feat % cand:
            continue
        if cand % _LANE == 0:
            return cand                     # largest lane-aligned divisor
        if best is None and cand % _SUBLANE == 0:
            best = cand                     # largest sublane-aligned divisor
    # Pathological (e.g. huge prime in_feat): fall back to full K; the explicit
    # vmem_limit_bytes still gives plenty of headroom for realistic sizes.
    return best if best is not None else in_feat


def _pick_m_tile(B: int, tk: int, n_pad: int, n_centers: int,
                 weight_tile_bytes: int, budget: int) -> int:
    """Batch tile from a whole-pipeline VMEM budget (lane-padded, double-buffered)."""
    tk_lanes = _round_up(tk, _LANE)
    nc_lanes = _round_up(n_centers, _LANE)
    fixed = 2 * weight_tile_bytes + 2 * _SUBLANE * n_pad * 4        # weight + bias
    per_row = (2 * tk_lanes * 4       # double-buffered x tile (f32 in VMEM)
               + n_pad * 4            # f32 accumulator scratch
               + 2 * nc_lanes * 4)    # double-buffered output tile (f32)
    avail = max(budget - fixed, per_row * _SUBLANE)
    tm = max(_SUBLANE, min(_MAX_TM, (avail // per_row) // _SUBLANE * _SUBLANE))
    tm = min(tm, _round_up(B, _SUBLANE))
    # Leave at least two batch tiles when there is enough work, so v7x's two
    # TensorCores both get a share of a mem-bound linear (harmless elsewhere).
    if tm >= _round_up(B, _SUBLANE) and B >= 2 * _SUBLANE:
        tm = _round_up(pl.cdiv(B, 2), _SUBLANE)
    return tm


def prepare_domain_predictor_params(weight, bias, compute_dtype=jnp.bfloat16):
    """One-time parameter prep (outside the per-call hot path).

    weight : (n_centers, in_feat)  PyTorch nn.Linear layout
    bias   : (n_centers,)
    returns (wt_padded, b_padded):
      wt_padded : (in_feat, n_pad) transposed, cast to compute_dtype,
                  zero-padded on N to a lane multiple
      b_padded  : (1, n_pad) f32, zero-padded
    """
    n_centers, in_feat = weight.shape
    n_pad = _round_up(n_centers, _LANE)
    wt_padded = jnp.zeros((in_feat, n_pad), compute_dtype)
    wt_padded = wt_padded.at[:, :n_centers].set(weight.T.astype(compute_dtype))
    b_padded = jnp.zeros((1, n_pad), jnp.float32)
    b_padded = b_padded.at[0, :n_centers].set(bias.astype(jnp.float32))
    return wt_padded, b_padded


def domain_predictor_forward(x, wt_padded, b_padded, n_centers):
    """Pallas equivalent of torch.nn.Linear(in_feat, n_centers)(x).

    x         : (B, in_feat) float32
    wt_padded : (in_feat, n_pad)  from prepare_domain_predictor_params
    b_padded  : (1, n_pad)        f32
    returns   : (B, n_centers)    float32
    """
    B, in_feat = x.shape
    k_dim, n_pad = wt_padded.shape
    assert k_dim == in_feat and n_pad % _LANE == 0
    comp_dt = wt_padded.dtype
    w_elt = wt_padded.dtype.itemsize

    # ---- tiling --------------------------------------------------------------
    tk = _pick_k_tile(in_feat, n_pad * w_elt, budget=_VMEM_TILE_BUDGET // 2)
    weight_tile_bytes = tk * n_pad * w_elt
    tm = _pick_m_tile(B, tk, n_pad, n_centers, weight_tile_bytes, _VMEM_TILE_BUDGET)

    nb = pl.cdiv(B, tm)          # ragged final batch tile handled by Pallas
    nk = in_feat // tk           # tk divides in_feat by construction

    # ---- kernel --------------------------------------------------------------
    def kernel(x_ref, wt_ref, b_ref, o_ref, acc_ref):
        k = pl.program_id(1)

        @pl.when(k == 0)
        def _init():
            acc_ref[...] = jnp.zeros_like(acc_ref)

        # bf16 MXU matmul with f32 accumulation; x cast happens in VMEM (no
        # extra HBM traffic on x).
        acc_ref[...] += jnp.dot(
            x_ref[...].astype(comp_dt),
            wt_ref[...],
            preferred_element_type=jnp.float32,
        )

        @pl.when(k == nk - 1)
        def _finalize():
            res = acc_ref[...] + b_ref[...]                    # f32 bias add
            o_ref[...] = res[:, :n_centers].astype(o_ref.dtype)

    cost = pl.CostEstimate(
        flops=2 * B * in_feat * n_pad,
        transcendentals=0,
        bytes_accessed=(x.size * x.dtype.itemsize
                        + wt_padded.size * w_elt
                        + b_padded.size * 4
                        + B * n_centers * 4),
    )

    out = pl.pallas_call(
        kernel,
        out_shape=jax.ShapeDtypeStruct((B, n_centers), x.dtype),
        grid=(nb, nk),
        in_specs=[
            # x: tiled over (batch, K); double-buffered prefetch.
            pl.BlockSpec((tm, tk), lambda i, k: (i, k)),
            # weight: tiled over K only; re-used across the whole batch grid.
            pl.BlockSpec((tk, n_pad), lambda i, k: (k, 0)),
            # bias: single lane-dense vreg row, resident across the grid.
            pl.BlockSpec((1, n_pad), lambda i, k: (0, 0)),
        ],
        # Unpadded output block: only n_centers lanes of HBM writeback.
        out_specs=pl.BlockSpec((tm, n_centers), lambda i, k: (i, 0)),
        scratch_shapes=[pltpu.VMEM((tm, n_pad), jnp.float32)],
        compiler_params=pltpu.CompilerParams(
            dimension_semantics=("parallel", "arbitrary"),
            vmem_limit_bytes=_VMEM_LIMIT_BYTES,
        ),
        cost_estimate=cost,
    )(x, wt_padded, b_padded)

    return out


if __name__ == "__main__":
    # Shapes implied by the module: x is (batch, in_feat), output (batch, n_centers).
    batch = 8
    in_feat = 32
    n_centers = 4

    key = jax.random.PRNGKey(0)
    kx, kw, kb = jax.random.split(key, 3)

    # Deterministic parameter init mimicking torch.nn.Linear's default:
    # U(-1/sqrt(in_feat), 1/sqrt(in_feat))
    bound = 1.0 / (in_feat ** 0.5)
    weight = jax.random.uniform(
        kw, (n_centers, in_feat), minval=-bound, maxval=bound, dtype=jnp.float32
    )
    bias = jax.random.uniform(
        kb, (n_centers,), minval=-bound, maxval=bound, dtype=jnp.float32
    )
    x = jax.random.normal(kx, (batch, in_feat), dtype=jnp.float32)

    # One-time parameter prep (transpose + N lane padding + bf16 cast).
    wt_padded, b_padded = prepare_domain_predictor_params(weight, bias)

    out = domain_predictor_forward(x, wt_padded, b_padded, n_centers)
    out = jax.block_until_ready(out)

    # Reference check against plain-JAX f32 linear (bf16 compute => loosened tol).
    ref = x @ weight.T + bias
    assert out.shape == (batch, n_centers)
    assert jnp.allclose(out, ref, atol=3e-2, rtol=3e-2)

    print("KERNEL_OK")
</pallas_src>

<mosaic_0001>
module attributes {stable_mosaic.version = 11 : i64} {
  func.func @kernel(%arg0: i32, %arg1: i32, %arg2: memref<8x32xf32, #tpu.memory_space<vmem>>, %arg3: memref<32x128xbf16, #tpu.memory_space<vmem>>, %arg4: memref<1x128xf32, #tpu.memory_space<vmem>>, %arg5: memref<8x4xf32, #tpu.memory_space<vmem>>, %arg6: memref<8x128xf32, #tpu.memory_space<vmem>>) attributes {dimension_semantics = [#tpu.dimension_semantics<parallel>, #tpu.dimension_semantics<arbitrary>], iteration_bounds = array<i64: 1, 1>, scalar_prefetch = 0 : i64, scratch_operands = 1 : i64, tpu.core_type = #tpu.core_type<tc>, window_params = [{transform_indices = @transform_0, window_bounds = array<i64: 8, 32>}, {transform_indices = @transform_1, window_bounds = array<i64: 32, 128>}, {pipeline_mode = #tpu.pipeline_mode<synchronous>, transform_indices = @transform_2, window_bounds = array<i64: 1, 128>}, {transform_indices = @transform_3, window_bounds = array<i64: 8, 4>}]} {
    %c0_i32 = arith.constant 0 : i32
    %0 = arith.cmpi eq, %arg1, %c0_i32 : i32
    %1 = arith.extui %0 : i1 to i32
    %c0_i32_0 = arith.constant 0 : i32
    %2 = arith.cmpi ne, %1, %c0_i32_0 : i32
    scf.if %2 {
      %cst_10 = arith.constant 0.000000e+00 : f32
      %13 = vector.broadcast %cst_10 : f32 to vector<8x128xf32>
      %c0_11 = arith.constant 0 : index
      %c0_12 = arith.constant 0 : index
      %14 = vector.load %arg6[%c0_11, %c0_12] : memref<8x128xf32, #tpu.memory_space<vmem>>, vector<8x128xf32>
      tpu.vector_store %arg6[%c0_11, %c0_12], %13 {strides = array<i32>} : memref<8x128xf32, #tpu.memory_space<vmem>>, vector<8x128xf32>,
    } else {
    }
    %c0 = arith.constant 0 : index
    %c0_1 = arith.constant 0 : index
    %3 = vector.load %arg6[%c0, %c0_1] : memref<8x128xf32, #tpu.memory_space<vmem>>, vector<8x128xf32>
    %c0_2 = arith.constant 0 : index
    %c0_3 = arith.constant 0 : index
    %4 = vector.load %arg2[%c0_2, %c0_3] : memref<8x32xf32, #tpu.memory_space<vmem>>, vector<8x32xf32>
    %5 = arith.truncf %4 : vector<8x32xf32> to vector<8x32xbf16>
    %c0_4 = arith.constant 0 : index
    %c0_5 = arith.constant 0 : index
    %6 = vector.load %arg3[%c0_4, %c0_5] : memref<32x128xbf16, #tpu.memory_space<vmem>>, vector<32x128xbf16>
    %cst = arith.constant dense<0.000000e+00> : vector<8x128xf32>
    %7 = tpu.matmul %5, %6, %cst {dimension_numbers = #tpu.dot_dimension_numbers<[1], [0], [0], [1], [0, 0, 1, 1], [], []>} : vector<8x32xbf16>, vector<32x128xbf16>, vector<8x128xf32> -> vector<8x128xf32>
    %8 = arith.addf %3, %7 : vector<8x128xf32>
    %c0_6 = arith.constant 0 : index
    %c0_7 = arith.constant 0 : index
    %9 = vector.load %arg6[%c0_6, %c0_7] : memref<8x128xf32, #tpu.memory_space<vmem>>, vector<8x128xf32>
    tpu.vector_store %arg6[%c0_6, %c0_7], %8 {strides = array<i32>} : memref<8x128xf32, #tpu.memory_space<vmem>>, vector<8x128xf32>,
    %c0_i32_8 = arith.constant 0 : i32
    %10 = arith.cmpi eq, %arg1, %c0_i32_8 : i32
    %11 = arith.extui %10 : i1 to i32
    %c0_i32_9 = arith.constant 0 : i32
    %12 = arith.cmpi ne, %11, %c0_i32_9 : i32
    scf.if %12 {
      %c0_10 = arith.constant 0 : index
      %c0_11 = arith.constant 0 : index
      %13 = vector.load %arg6[%c0_10, %c0_11] : memref<8x128xf32, #tpu.memory_space<vmem>>, vector<8x128xf32>
      %c0_12 = arith.constant 0 : index
      %c0_13 = arith.constant 0 : index
      %14 = vector.load %arg4[%c0_12, %c0_13] : memref<1x128xf32, #tpu.memory_space<vmem>>, vector<1x128xf32>
      %15 = vector.broadcast %14 : vector<1x128xf32> to vector<8x128xf32>
      %16 = arith.addf %13, %15 : vector<8x128xf32>
      %17 = vector.extract_strided_slice %16 {offsets = [0, 0], sizes = [8, 4], strides = [1, 1]} : vector<8x128xf32> to vector<8x4xf32>
      %c0_14 = arith.constant 0 : index
      %c0_15 = arith.constant 0 : index
      %18 = vector.load %arg5[%c0_14, %c0_15] : memref<8x4xf32, #tpu.memory_space<vmem>>, vector<8x4xf32>
      tpu.vector_store %arg5[%c0_14, %c0_15], %17 {strides = array<i32>} : memref<8x4xf32, #tpu.memory_space<vmem>>, vector<8x4xf32>,
    } else {
    }
    return
  }
  func.func @transform_0(%arg0: i32, %arg1: i32) -> (i32, i32) {
    %c0_i32 = arith.constant 0 : i32
    return %arg0, %arg1 : i32, i32
  }
  func.func @transform_1(%arg0: i32, %arg1: i32) -> (i32, i32) {
    %c0_i32 = arith.constant 0 : i32
    %c0_i32_0 = arith.constant 0 : i32
    return %arg1, %c0_i32 : i32, i32
  }
  func.func @transform_2(%arg0: i32, %arg1: i32) -> (i32, i32) {
    %c0_i32 = arith.constant 0 : i32
    %c0_i32_0 = arith.constant 0 : i32
    %c0_i32_1 = arith.constant 0 : i32
    return %c0_i32, %c0_i32_0 : i32, i32
  }
  func.func @transform_3(%arg0: i32, %arg1: i32) -> (i32, i32) {
    %c0_i32 = arith.constant 0 : i32
    %c0_i32_0 = arith.constant 0 : i32
    return %arg0, %c0_i32 : i32, i32
  }
}

</mosaic_0001>

<bundles_post_ra>
// kernel: tpu_custom_call.1
= control target key start
LH: loop header
LB: loop body
LE: loop exit
PB: predicated region body
PF: predicated region fallthrough
CT: control target
= control target key end

     0   :  { %8 = vsyncpa [#allocation4], 0  ;;  %s265_s0 = inlined_call_operand.hbm [shape: f32[8,32], index: 0, kind: input, shape index: {}]   ;;  %s266_s1 = inlined_call_operand.hbm [shape: bf16[32,128], index: 1, kind: input, shape index: {}]   ;;  %s267_s2 = inlined_call_operand.vmem [shape: f32[1,128], index: 2, kind: input, shape index: {}]   ;;  %s268_s3 = inlined_call_operand.vmem [shape: f32[8,4], index: 3, kind: output, shape index: {}]  }
   0x1   :  { %9 = vsyncpa [#allocation6], 0  ;;  %s202_s12 = smov [#allocation3]   ;;  %s203_s14 = smov [#allocation5]  }
   0x2   :  { %s16_s13 = sshll.u32 %s202_s12, 4  ;;  %s25_s15 = sshll.u32 %s203_s14, 4  ;;  %s17_s13 = int_to_ptr.vmem [resolvable:$true] %s16_s13  ;;  %s228_s15 = int_to_ptr.vmem [resolvable:$true] %s25_s15 }
   0x3   :  { %s154_s18 = scalar_lea.hbm %s265_s0, 128 }
   0x4   :  { %p155_p0 = scmp.ne.s32.totalorder %s265_s0, %s154_s18  ;;  %p158_p1 = scmp.lt.u32.totalorder %s154_s18, %s265_s0 }
   0x6   :  { %p160_p2 = pnand %p158_p1, %p155_p0 }
   0x8   :  { %163 = shalt.err (!%p160_p2)
}
   0x9   :  { %s164_s23 = scalar_lea.vmem %s17_s13, 128  ;;  %p169_p4 = scmp.lt.s32.totalorder %s17_s13, %s17_s13 }
   0xa   :  { %p165_p3 = scmp.ne.s32.totalorder %s17_s13, %s164_s23  ;;  %p170_p5 = scmp.lt.s32.totalorder %s164_s23, %s164_s23 }
   0xc   :  { %p171_p6 = por %p170_p5, %p169_p4 }
   0xe   :  { %p172_p7 = pnand %p171_p6, %p165_p3 }
  0x10   :  { %175 = shalt.err (!%p172_p7)
}
  0x11   :  { %19 = dma.hbm_to_vmem [thread:$0]  %s265_s0, 128, %s17_s13, [#allocation4]  }
  0x12   :  { %s176_s28 = scalar_lea.hbm %s266_s1, 256 }
  0x13   :  { %p177_p8 = scmp.ne.s32.totalorder %s266_s1, %s176_s28  ;;  %p180_p9 = scmp.lt.u32.totalorder %s176_s28, %s266_s1 }
  0x15   :  { %p182_p10 = pnand %p180_p9, %p177_p8 }
  0x17   :  { %185 = shalt.err (!%p182_p10)
}
  0x18   :  { %s186_s6 = scalar_lea.vmem %s228_s15, 256  ;;  %p191_p12 = scmp.lt.s32.totalorder %s228_s15, %s228_s15 }
  0x19   :  { %p187_p11 = scmp.ne.s32.totalorder %s228_s15, %s186_s6  ;;  %p192_p13 = scmp.lt.s32.totalorder %s186_s6, %s186_s6 }
  0x1b   :  { %p193_p0 = por %p192_p13, %p191_p12 }
  0x1d   :  { %p194_p1 = pnand %p193_p0, %p187_p11 }
  0x1f   :  { %197 = shalt.err (!%p194_p1)
}
  0x20   :  { %s204_s0 = smov 64   ;;  %s205_s7 = smov 4  }
  0x21   :  { %31 = dma.hbm_to_vmem [thread:$0]  %s266_s1, 256, %s228_s15, [#allocation6], %s204_s0, %s204_s0, %s205_s7  }
  0x22   :  { %198 = dma.done.wait [#allocation4], 128  }
  0x23   :  { %199 = vsyncadd [#allocation4], 4294967168 }
  0x24   :  { %200 = dma.done.wait [#allocation6], 256  }
  0x25   :  { %201 = vsyncadd [#allocation6], 4294967040  ;;  %v206_v0 = vmov 0.0   ;;  %vm207_vm0 = vmmov 0   ;;  %v152_v1 = vld [vmem:[#allocation5] sm:$0xff]   ;;  %v153_v2 = vld [vmem:[#allocation5 + $0x8] sm:$0xff]  }
  0x26   :  { %138 = vmatprep.subr.bf16.mxu0 %v206_v0  ;;  %142 = vmatprep.mubr.msk.bf16.mxu0 %vm207_vm0, %v206_v0  ;;  %v47_v3 = vld [vmem:[#allocation3] sm:$0xff]  ;;  %vm65_vm1 = vcmask 261120   ;;  %v134_v5 = vld [vmem:[%s267_s2] ss:$0 sm:$0xff]  ;;  %vm123_vm2 = vcmask 31744  }
  0x27   :  { %139 = vmatpush3.bf16.msra.mxu0 %v152_v1  ;;  %v48_v4 = vpack.c.bf16 %v47_v3, %v47_v3 }
  0x28   :  { %140 = vmatprep.subr.bf16.mxu0 %v206_v0 }
  0x2b   :  { %141 = vmatpush3.bf16.msra.mxu0 %v153_v2 }
  0x2e   :  { %143 = vmatmul.mubr.msk.bf16.vlgmr.msra.gmra.mrb[0].mxu0 %vm65_vm1, %v48_v4 }
 0x101   :  { %v103_v6 = vpop.f32.mrb[0].mxu0 }
 0x102   :  { %v122_v7 = vadd.f32 %v134_v5, %v103_v6  ;;  %v144_v8 = vpop.f32.mrb[1].mxu0 }
 0x103   :  { %v106_v9 = vpop.f32.mrb[2].mxu0 }
 0x104   :  { %124 = vst.msk [vmem:[%s268_s3] sm:$0xff] %vm123_vm2, %v122_v7  ;;  %v145_v10 = vpop.f32.mrb[3].mxu0 }
 0x105   :  { %129 = vsyncpa [#allocation4], 1 }
 0x106   :  { %130 = vsyncpa [#allocation6], 1 }

</bundles_post_ra>
